<compile_context>
chip_gen: v7x
topology: tpu7x:2x2x1
jax: 0.10.0
libtpu: 0.0.40
codegen_flags: <defaults>
</compile_context>

<pallas_src>
import jax
import jax.numpy as jnp
from jax.experimental import pallas as pl
from jax.experimental.pallas import tpu as pltpu

_LANE = 128
_CHUNK = 512          # lanes processed per inner strip
_MAX_TILE = 8192      # max batch-tile width (multiple of _CHUNK)


def _mlp_kernel(x_ref, w1_ref, b1_ref, w2_ref, b2_ref, o_ref):
    # x_ref:  (3, TB)   batch on the lane axis (native input dtype)
    # w1_ref: (5, 3)    b1_ref: (5, 1)     (f32)
    # w2_ref: (5, 5)    b2_ref: (5, 1)     (f32)
    # o_ref:  (5, TB)   (same dtype as the input x)
    w1 = w1_ref[...]
    w2 = w2_ref[...]
    b1 = b1_ref[...]          # (5, 1) broadcasts along lanes
    b2 = b2_ref[...]

    f_in = w1.shape[1]
    f_hid = w2.shape[1]
    tb = x_ref.shape[1]

    # Strip-mine the block in 512-lane chunks (static slices -> zero-cost views)
    # so vreg live ranges stay bounded even for TB up to 8192.
    chunk = _CHUNK if (tb > _CHUNK and tb % _CHUNK == 0) else tb
    n_chunks = tb // chunk

    for c in range(n_chunks):
        lo = c * chunk
        hi = lo + chunk
        xc = x_ref[:, lo:hi].astype(jnp.float32)   # cast in-kernel (free VPU op)

        # Layer 1: h = relu(w1 @ x + b1) as unrolled VPU FMAs (K = 3).
        h = b1
        for k in range(f_in):
            h = h + w1[:, k:k + 1] * xc[k:k + 1, :]
        h = jnp.maximum(h, jnp.float32(0.0))

        # Layer 2: y = w2 @ h + b2 as unrolled VPU FMAs (K = 5).
        y = b2
        for k in range(f_hid):
            y = y + w2[:, k:k + 1] * h[k:k + 1, :]

        o_ref[:, lo:hi] = y.astype(o_ref.dtype)


def _choose_batch_tile(B):
    """Pick a lane-aligned batch tile.

    * tiny batches: single block covering the (128-aligned) batch.
    * large batches: a large tile (<= 8192, multiple of 512 for strip-mining),
      capped at ~half the padded batch so the grid has >= 2 steps and the
      "parallel" axis can split across v7x's two TensorCores.
    """
    b_aligned = ((B + _LANE - 1) // _LANE) * _LANE
    if b_aligned <= 1024:
        return b_aligned
    half = (b_aligned // 2) // _CHUNK * _CHUNK
    return max(_CHUNK, min(_MAX_TILE, half))


def pytorch_model_forward(x, w1, b1, w2, b2):
    """x: (B, 3); w1: (5, 3); b1: (5,); w2: (5, 5); b2: (5,) -> (B, 5)"""
    B, f_in = x.shape
    f_hid = w1.shape[0]
    f_out = w2.shape[0]

    tb = _choose_batch_tile(B)
    b_pad = ((B + tb - 1) // tb) * tb

    # Present the batch on the lane axis, keep the native dtype (no wrapper
    # upcast); a single transpose(+pad) copy is all the layout work needed.
    x_t = x.T
    if b_pad != B:
        x_t = jnp.pad(x_t, ((0, 0), (0, b_pad - B)))

    w1f = w1.astype(jnp.float32)
    w2f = w2.astype(jnp.float32)
    b1_2d = b1.astype(jnp.float32).reshape(f_hid, 1)
    b2_2d = b2.astype(jnp.float32).reshape(f_out, 1)

    grid = (b_pad // tb,)

    out_t = pl.pallas_call(
        _mlp_kernel,
        out_shape=jax.ShapeDtypeStruct((f_out, b_pad), x.dtype),
        grid_spec=pltpu.PrefetchScalarGridSpec(
            num_scalar_prefetch=0,
            grid=grid,
            in_specs=[
                pl.BlockSpec((f_in, tb), lambda i: (0, i)),      # x tile (pipelined)
                pl.BlockSpec((f_hid, f_in), lambda i: (0, 0)),   # w1 (resident)
                pl.BlockSpec((f_hid, 1), lambda i: (0, 0)),      # b1 (resident)
                pl.BlockSpec((f_out, f_hid), lambda i: (0, 0)),  # w2 (resident)
                pl.BlockSpec((f_out, 1), lambda i: (0, 0)),      # b2 (resident)
            ],
            out_specs=pl.BlockSpec((f_out, tb), lambda i: (0, i)),
        ),
        compiler_params=pltpu.CompilerParams(
            dimension_semantics=("parallel",),
        ),
    )(x_t, w1f, b1_2d, w2f, b2_2d)

    # Drop padded columns and return in PyTorch (B, F_out) layout / x.dtype.
    return out_t[:, :B].T


def _reference(x, w1, b1, w2, b2):
    xf = x.astype(jnp.float32)
    h = jnp.maximum(xf @ w1.T + b1, 0.0)
    return (h @ w2.T + b2).astype(x.dtype)


if __name__ == "__main__":
    key = jax.random.PRNGKey(0)
    kx, kw1, kb1, kw2, kb2, kx2, kx3 = jax.random.split(key, 7)

    F_IN, F_HID, F_OUT = 3, 5, 5

    # Deterministic synthetic parameters (shapes per nn.Linear(3,5), nn.Linear(5,5)).
    w1 = jax.random.normal(kw1, (F_HID, F_IN), dtype=jnp.float32) * 0.5
    b1 = jax.random.normal(kb1, (F_HID,), dtype=jnp.float32) * 0.1
    w2 = jax.random.normal(kw2, (F_OUT, F_HID), dtype=jnp.float32) * 0.5
    b2 = jax.random.normal(kb2, (F_OUT,), dtype=jnp.float32) * 0.1

    # Small batch (single padded 128-wide tile).
    B = 8
    x = jax.random.normal(kx, (B, F_IN), dtype=jnp.float32)
    out = jax.block_until_ready(pytorch_model_forward(x, w1, b1, w2, b2))
    ref = _reference(x, w1, b1, w2, b2)
    assert out.shape == (B, F_OUT)
    assert jnp.allclose(out, ref, atol=1e-5, rtol=1e-5), "mismatch vs reference (B=8)"

    # Ragged batch, single large block (tb = 640).
    B2 = 600
    x2 = jax.random.normal(kx2, (B2, F_IN), dtype=jnp.float32)
    out2 = jax.block_until_ready(pytorch_model_forward(x2, w1, b1, w2, b2))
    ref2 = _reference(x2, w1, b1, w2, b2)
    assert out2.shape == (B2, F_OUT)
    assert jnp.allclose(out2, ref2, atol=1e-5, rtol=1e-5), "mismatch vs reference (B=600)"

    # Larger batch: exercises multi-step grid (>=2 steps) + in-kernel strip-mining.
    B3 = 3000
    x3 = jax.random.normal(kx3, (B3, F_IN), dtype=jnp.float32)
    out3 = jax.block_until_ready(pytorch_model_forward(x3, w1, b1, w2, b2))
    ref3 = _reference(x3, w1, b1, w2, b2)
    assert out3.shape == (B3, F_OUT)
    assert jnp.allclose(out3, ref3, atol=1e-5, rtol=1e-5), "mismatch vs reference (B=3000)"

    print("KERNEL_OK")
</pallas_src>

<mosaic_0001>
module attributes {stable_mosaic.version = 11 : i64} {
  func.func @_mlp_kernel(%arg0: i32, %arg1: memref<3x128xf32, #tpu.memory_space<vmem>>, %arg2: memref<5x3xf32, #tpu.memory_space<vmem>>, %arg3: memref<5x1xf32, #tpu.memory_space<vmem>>, %arg4: memref<5x5xf32, #tpu.memory_space<vmem>>, %arg5: memref<5x1xf32, #tpu.memory_space<vmem>>, %arg6: memref<5x128xf32, #tpu.memory_space<vmem>>) attributes {dimension_semantics = [#tpu.dimension_semantics<parallel>], iteration_bounds = array<i64: 1>, scalar_prefetch = 0 : i64, scratch_operands = 0 : i64, tpu.core_type = #tpu.core_type<tc>, window_params = [{transform_indices = @transform_0, window_bounds = array<i64: 3, 128>}, {pipeline_mode = #tpu.pipeline_mode<synchronous>, transform_indices = @transform_1, window_bounds = array<i64: 5, 3>}, {pipeline_mode = #tpu.pipeline_mode<synchronous>, transform_indices = @transform_2, window_bounds = array<i64: 5, 1>}, {pipeline_mode = #tpu.pipeline_mode<synchronous>, transform_indices = @transform_3, window_bounds = array<i64: 5, 5>}, {pipeline_mode = #tpu.pipeline_mode<synchronous>, transform_indices = @transform_4, window_bounds = array<i64: 5, 1>}, {transform_indices = @transform_5, window_bounds = array<i64: 5, 128>}]} {
    %c0 = arith.constant 0 : index
    %c0_0 = arith.constant 0 : index
    %0 = vector.load %arg2[%c0, %c0_0] : memref<5x3xf32, #tpu.memory_space<vmem>>, vector<5x3xf32>
    %c0_1 = arith.constant 0 : index
    %c0_2 = arith.constant 0 : index
    %1 = vector.load %arg4[%c0_1, %c0_2] : memref<5x5xf32, #tpu.memory_space<vmem>>, vector<5x5xf32>
    %c0_3 = arith.constant 0 : index
    %c0_4 = arith.constant 0 : index
    %2 = vector.load %arg3[%c0_3, %c0_4] : memref<5x1xf32, #tpu.memory_space<vmem>>, vector<5x1xf32>
    %c0_5 = arith.constant 0 : index
    %c0_6 = arith.constant 0 : index
    %3 = vector.load %arg5[%c0_5, %c0_6] : memref<5x1xf32, #tpu.memory_space<vmem>>, vector<5x1xf32>
    %c0_7 = arith.constant 0 : index
    %c0_8 = arith.constant 0 : index
    %4 = vector.load %arg1[%c0_7, %c0_8] : memref<3x128xf32, #tpu.memory_space<vmem>>, vector<3x128xf32>
    %5 = vector.extract_strided_slice %0 {offsets = [0, 0], sizes = [5, 1], strides = [1, 1]} : vector<5x3xf32> to vector<5x1xf32>
    %6 = vector.extract_strided_slice %4 {offsets = [0, 0], sizes = [1, 128], strides = [1, 1]} : vector<3x128xf32> to vector<1x128xf32>
    %7 = vector.broadcast %5 : vector<5x1xf32> to vector<5x128xf32>
    %8 = vector.broadcast %6 : vector<1x128xf32> to vector<5x128xf32>
    %9 = arith.mulf %7, %8 : vector<5x128xf32>
    %10 = vector.broadcast %2 : vector<5x1xf32> to vector<5x128xf32>
    %11 = arith.addf %10, %9 : vector<5x128xf32>
    %12 = vector.extract_strided_slice %0 {offsets = [0, 1], sizes = [5, 1], strides = [1, 1]} : vector<5x3xf32> to vector<5x1xf32>
    %13 = vector.extract_strided_slice %4 {offsets = [1, 0], sizes = [1, 128], strides = [1, 1]} : vector<3x128xf32> to vector<1x128xf32>
    %14 = vector.broadcast %12 : vector<5x1xf32> to vector<5x128xf32>
    %15 = vector.broadcast %13 : vector<1x128xf32> to vector<5x128xf32>
    %16 = arith.mulf %14, %15 : vector<5x128xf32>
    %17 = arith.addf %11, %16 : vector<5x128xf32>
    %18 = vector.extract_strided_slice %0 {offsets = [0, 2], sizes = [5, 1], strides = [1, 1]} : vector<5x3xf32> to vector<5x1xf32>
    %19 = vector.extract_strided_slice %4 {offsets = [2, 0], sizes = [1, 128], strides = [1, 1]} : vector<3x128xf32> to vector<1x128xf32>
    %20 = vector.broadcast %18 : vector<5x1xf32> to vector<5x128xf32>
    %21 = vector.broadcast %19 : vector<1x128xf32> to vector<5x128xf32>
    %22 = arith.mulf %20, %21 : vector<5x128xf32>
    %23 = arith.addf %17, %22 : vector<5x128xf32>
    %cst = arith.constant 0.000000e+00 : f32
    %24 = vector.broadcast %cst : f32 to vector<5x128xf32>
    %25 = arith.maximumf %23, %24 : vector<5x128xf32>
    %26 = vector.extract_strided_slice %1 {offsets = [0, 0], sizes = [5, 1], strides = [1, 1]} : vector<5x5xf32> to vector<5x1xf32>
    %27 = vector.extract_strided_slice %25 {offsets = [0, 0], sizes = [1, 128], strides = [1, 1]} : vector<5x128xf32> to vector<1x128xf32>
    %28 = vector.broadcast %26 : vector<5x1xf32> to vector<5x128xf32>
    %29 = vector.broadcast %27 : vector<1x128xf32> to vector<5x128xf32>
    %30 = arith.mulf %28, %29 : vector<5x128xf32>
    %31 = vector.broadcast %3 : vector<5x1xf32> to vector<5x128xf32>
    %32 = arith.addf %31, %30 : vector<5x128xf32>
    %33 = vector.extract_strided_slice %1 {offsets = [0, 1], sizes = [5, 1], strides = [1, 1]} : vector<5x5xf32> to vector<5x1xf32>
    %34 = vector.extract_strided_slice %25 {offsets = [1, 0], sizes = [1, 128], strides = [1, 1]} : vector<5x128xf32> to vector<1x128xf32>
    %35 = vector.broadcast %33 : vector<5x1xf32> to vector<5x128xf32>
    %36 = vector.broadcast %34 : vector<1x128xf32> to vector<5x128xf32>
    %37 = arith.mulf %35, %36 : vector<5x128xf32>
    %38 = arith.addf %32, %37 : vector<5x128xf32>
    %39 = vector.extract_strided_slice %1 {offsets = [0, 2], sizes = [5, 1], strides = [1, 1]} : vector<5x5xf32> to vector<5x1xf32>
    %40 = vector.extract_strided_slice %25 {offsets = [2, 0], sizes = [1, 128], strides = [1, 1]} : vector<5x128xf32> to vector<1x128xf32>
    %41 = vector.broadcast %39 : vector<5x1xf32> to vector<5x128xf32>
    %42 = vector.broadcast %40 : vector<1x128xf32> to vector<5x128xf32>
    %43 = arith.mulf %41, %42 : vector<5x128xf32>
    %44 = arith.addf %38, %43 : vector<5x128xf32>
    %45 = vector.extract_strided_slice %1 {offsets = [0, 3], sizes = [5, 1], strides = [1, 1]} : vector<5x5xf32> to vector<5x1xf32>
    %46 = vector.extract_strided_slice %25 {offsets = [3, 0], sizes = [1, 128], strides = [1, 1]} : vector<5x128xf32> to vector<1x128xf32>
    %47 = vector.broadcast %45 : vector<5x1xf32> to vector<5x128xf32>
    %48 = vector.broadcast %46 : vector<1x128xf32> to vector<5x128xf32>
    %49 = arith.mulf %47, %48 : vector<5x128xf32>
    %50 = arith.addf %44, %49 : vector<5x128xf32>
    %51 = vector.extract_strided_slice %1 {offsets = [0, 4], sizes = [5, 1], strides = [1, 1]} : vector<5x5xf32> to vector<5x1xf32>
    %52 = vector.extract_strided_slice %25 {offsets = [4, 0], sizes = [1, 128], strides = [1, 1]} : vector<5x128xf32> to vector<1x128xf32>
    %53 = vector.broadcast %51 : vector<5x1xf32> to vector<5x128xf32>
    %54 = vector.broadcast %52 : vector<1x128xf32> to vector<5x128xf32>
    %55 = arith.mulf %53, %54 : vector<5x128xf32>
    %56 = arith.addf %50, %55 : vector<5x128xf32>
    %c0_9 = arith.constant 0 : index
    %c0_10 = arith.constant 0 : index
    %57 = vector.load %arg6[%c0_9, %c0_10] : memref<5x128xf32, #tpu.memory_space<vmem>>, vector<5x128xf32>
    tpu.vector_store %arg6[%c0_9, %c0_10], %56 {strides = array<i32>} : memref<5x128xf32, #tpu.memory_space<vmem>>, vector<5x128xf32>,
    return
  }
  func.func @transform_0(%arg0: i32) -> (i32, i32) {
    %c0_i32 = arith.constant 0 : i32
    %c0_i32_0 = arith.constant 0 : i32
    return %c0_i32, %arg0 : i32, i32
  }
  func.func @transform_1(%arg0: i32) -> (i32, i32) {
    %c0_i32 = arith.constant 0 : i32
    %c0_i32_0 = arith.constant 0 : i32
    %c0_i32_1 = arith.constant 0 : i32
    return %c0_i32, %c0_i32_0 : i32, i32
  }
  func.func @transform_2(%arg0: i32) -> (i32, i32) {
    %c0_i32 = arith.constant 0 : i32
    %c0_i32_0 = arith.constant 0 : i32
    %c0_i32_1 = arith.constant 0 : i32
    return %c0_i32, %c0_i32_0 : i32, i32
  }
  func.func @transform_3(%arg0: i32) -> (i32, i32) {
    %c0_i32 = arith.constant 0 : i32
    %c0_i32_0 = arith.constant 0 : i32
    %c0_i32_1 = arith.constant 0 : i32
    return %c0_i32, %c0_i32_0 : i32, i32
  }
  func.func @transform_4(%arg0: i32) -> (i32, i32) {
    %c0_i32 = arith.constant 0 : i32
    %c0_i32_0 = arith.constant 0 : i32
    %c0_i32_1 = arith.constant 0 : i32
    return %c0_i32, %c0_i32_0 : i32, i32
  }
  func.func @transform_5(%arg0: i32) -> (i32, i32) {
    %c0_i32 = arith.constant 0 : i32
    %c0_i32_0 = arith.constant 0 : i32
    return %c0_i32, %arg0 : i32, i32
  }
}

</mosaic_0001>

<bundles_post_ra>
// kernel: tpu_custom_call.1
= control target key start
LH: loop header
LB: loop body
LE: loop exit
PB: predicated region body
PF: predicated region fallthrough
CT: control target
= control target key end

     0   :  { %v172_v1 = vmov 1   ;;  %v173_v2 = vmov 0   ;;  %s235_s0 = inlined_call_operand.vmem [shape: f32[3,128], index: 0, kind: input, shape index: {}]   ;;  %s236_s1 = inlined_call_operand.vmem [shape: f32[5,3], index: 1, kind: input, shape index: {}]   ;;  %s237_s2 = inlined_call_operand.vmem [shape: f32[5,1], index: 2, kind: input, shape index: {}]   ;;  %s238_s3 = inlined_call_operand.vmem [shape: f32[5,5], index: 3, kind: input, shape index: {}]   ;;  %s239_s4 = inlined_call_operand.vmem [shape: f32[5,1], index: 4, kind: input, shape index: {}]   ;;  %s240_s5 = inlined_call_operand.hbm [shape: f32[5,128], index: 5, kind: output, shape index: {}]  }
   0x1   :  { %v21_v0 = vld [vmem:[%s236_s1] sm:$0x1f]  ;;  %141 = vset.pattern.permute.xlu1 %v172_v1  ;;  %140 = vset.pattern.permute.xlu0 %v173_v2 }
   0x2   :  { %43 = vperm.xlu1 %141, %v21_v0   ;;  %28 = vperm.xlu0 %140, %v21_v0  }
   0x3   :  { %10 = vsyncpa [#allocation3], 0  ;;  %v23_v3 = vld [vmem:[%s237_s2] sm:$0x1f]  ;;  %v174_v4 = vmov 2   ;;  %v175_v7 = vmov 4   ;;  %v31_v9 = vlaneseq }
   0x4   :  { %v22_v5 = vld [vmem:[%s238_s3] sm:$0x1f]  ;;  %v176_v8 = vmov 3  }
   0x5   :  { %v24_v6 = vld [vmem:[%s239_s4] sm:$0x1f]  ;;  %v32_v10 = vshrl.u32 %v31_v9, 7 }
   0x6   :  { %142 = vset.pattern.permute.xlu1 %v174_v4  ;;  %38 = vperm.xlu0 %140, %v23_v3   ;;  %v25_v12 = vld [vmem:[%s235_s0] sm:$0x7]  ;;  %s177_s0 = smov [#allocation2]  }
   0x7   :  { %53 = vperm.xlu1 %142, %v21_v0   ;;  %v33_v11 = vsub.s32 0, %v32_v10  ;;  %v48_v13 = vsub.s32 1, %v32_v10  ;;  %v58_v14 = vsub.s32 2, %v32_v10  ;;  %v105_v37 = vsub.s32 3, %v32_v10  ;;  %s126_s4 = sshll.u32 %s177_s0, 4  ;;  %s127_s4 = int_to_ptr.vmem [resolvable:$true] %s126_s4 }
   0x8   :  { %v115_v40 = vsub.s32 4, %v32_v10  ;;  %s148_s25 = scalar_lea.vmem %s127_s4, 128  ;;  %p153_p1 = scmp.lt.s32.totalorder %s127_s4, %s127_s4 }
   0x9   :  { %v34_v15 = vrot.slane %v25_v12, %v33_v11  ;;  %v49_v18 = vrot.slane %v25_v12, %v48_v13  ;;  %v59_v19 = vrot.slane %v25_v12, %v58_v14  ;;  %p149_p0 = scmp.ne.s32.totalorder %s127_s4, %s148_s25  ;;  %p154_p2 = scmp.lt.s32.totalorder %s148_s25, %s148_s25 }
   0xa   :  { %65 = vperm.xlu0 %140, %v22_v5  }
   0xb   :  { %143 = vset.pattern.permute.xlu1 %v173_v2  ;;  %p155_p3 = por %p154_p2, %p153_p1 }
   0xc   :  { %75 = vperm.xlu1 %143, %v24_v6  }
   0xd   :  { %p156_p4 = pnand %p155_p3, %p149_p0 }
   0xe   :  { %144 = vset.pattern.permute.xlu0 %v172_v1 }
   0xf   :  { %80 = vperm.xlu0 %144, %v22_v5  }
  0x10   :  { %145 = vset.pattern.permute.xlu1 %v174_v4 }
  0x11   :  { %90 = vperm.xlu1 %145, %v22_v5  }
  0x13   :  { %147 = vset.pattern.permute.xlu0 %v175_v7 }
  0x14   :  { %110 = vperm.xlu0 %147, %v22_v5  }
  0x15   :  { %146 = vset.pattern.permute.xlu1 %v176_v8 }
  0x16   :  { %100 = vperm.xlu1 %146, %v22_v5  }
  0x81   :  { %v44_v16 = vpop.permute.xlu1 %43  ;;  %v29_v17 = vpop.permute.xlu0 %28 }
  0x82   :  { %v35_v20 = vmul.f32 %v34_v15, %v29_v17  ;;  %v50_v22 = vmul.f32 %v49_v18, %v44_v16 }
  0x85   :  { %v39_v21 = vpop.permute.xlu0 %38 }
  0x86   :  { %v41_v23 = vadd.f32 %v39_v21, %v35_v20  ;;  %v54_v24 = vpop.permute.xlu1 %53 }
  0x87   :  { %v60_v25 = vmul.f32 %v59_v19, %v54_v24 }
  0x88   :  { %v51_v26 = vadd.f32 %v50_v22, %v41_v23 }
  0x89   :  { %v66_v28 = vpop.permute.xlu0 %65 }
  0x8a   :  { %v61_v27 = vadd.f32 %v60_v25, %v51_v26 }
  0x8b   :  { %v76_v29 = vpop.permute.xlu1 %75 }
  0x8c   :  { %v62_v30 = vmax.f32 %v61_v27, 0.0 }
  0x8e   :  { %v71_v31 = vrot.slane %v62_v30, %v33_v11  ;;  %v86_v32 = vrot.slane %v62_v30, %v48_v13  ;;  %v81_v33 = vpop.permute.xlu0 %80  ;;  %v96_v36 = vrot.slane %v62_v30, %v58_v14  ;;  %v106_v43 = vrot.slane %v62_v30, %v105_v37 }
  0x8f   :  { %v116_v47 = vrot.slane %v62_v30, %v115_v40 }
  0x90   :  { %v72_v34 = vmul.f32 %v71_v31, %v66_v28  ;;  %v91_v35 = vpop.permute.xlu1 %90  ;;  %v87_v39 = vmul.f32 %v86_v32, %v81_v33 }
  0x91   :  { %v97_v42 = vmul.f32 %v96_v36, %v91_v35 }
  0x92   :  { %v78_v38 = vadd.f32 %v76_v29, %v72_v34 }
  0x93   :  { %v111_v44 = vpop.permute.xlu0 %110 }
  0x94   :  { %v88_v41 = vadd.f32 %v87_v39, %v78_v38  ;;  %v117_v49 = vmul.f32 %v116_v47, %v111_v44 }
  0x95   :  { %v101_v45 = vpop.permute.xlu1 %100 }
  0x96   :  { %v98_v46 = vadd.f32 %v97_v42, %v88_v41  ;;  %v107_v48 = vmul.f32 %v106_v43, %v101_v45 }
  0x98   :  { %v108_v50 = vadd.f32 %v107_v48, %v98_v46 }
  0x9a   :  { %v118_v51 = vadd.f32 %v117_v49, %v108_v50 }
  0x9c   :  { %119 = vst [vmem:[#allocation2] sm:$0x1f] %v118_v51 }
  0x9d   :  { %159 = shalt.err (!%p156_p4)
}
  0x9e   :  { %s160_s28 = scalar_lea.hbm %s240_s5, 128 }
  0x9f   :  { %p161_p5 = scmp.ne.s32.totalorder %s240_s5, %s160_s28  ;;  %p164_p6 = scmp.lt.u32.totalorder %s160_s28, %s240_s5 }
  0xa1   :  { %p166_p7 = pnand %p164_p6, %p161_p5 }
  0xa3   :  { %169 = shalt.err (!%p166_p7)
}
  0xa4   :  { %129 = dma.vmem_to_hbm [thread:$0]  %s127_s4, 128, %s240_s5, [#allocation3]  }
  0xa5   :  { %170 = dma.done.wait [#allocation3], 128  }
  0xa6   :  { %171 = vsyncadd [#allocation3], 4294967168 }
  0xa7   :  { %133 = vsyncpa [#allocation3], 1 }

</bundles_post_ra>
